<compile_context>
chip_gen: v7x
topology: tpu7x:2x2x1
jax: 0.10.0
libtpu: 0.0.40
codegen_flags: <defaults>
</compile_context>

<pallas_src>
import jax
import jax.numpy as jnp
from jax.experimental import pallas as pl
from jax.experimental.pallas import tpu as pltpu


def _identity_dma_kernel(x_hbm_ref, o_hbm_ref, sem):
    # Single HBM->HBM DMA of the whole array; no VMEM staging, no grid.
    cp = pltpu.make_async_copy(x_hbm_ref, o_hbm_ref, sem)
    cp.start()
    cp.wait()


def infer_head_forward(x):
    """Pallas identity forward of `test_head_old` (forward(x) -> x).

    The functionally cheapest implementation is `return x`; a Pallas kernel
    is kept per the exercise, implemented as one HBM->HBM DMA descriptor
    (no VMEM round-trip, no TensorCore work, no grid).  Callers that want to
    avoid even the single output allocation can donate the input via
    jax.jit(infer_head_forward, donate_argnums=0).
    """
    return pl.pallas_call(
        _identity_dma_kernel,
        out_shape=jax.ShapeDtypeStruct(x.shape, x.dtype),
        in_specs=[pl.BlockSpec(memory_space=pl.ANY)],
        out_specs=pl.BlockSpec(memory_space=pl.ANY),
        scratch_shapes=[pltpu.SemaphoreType.DMA],
    )(x)


class TestHeadOld:
    """JAX counterpart of the PyTorch `test_head_old` module (inference path)."""

    def __init__(self, num_classes, dim=1024, multi_class=False,
                 label_smooth_eps=0.0):
        self.num_classes = num_classes
        self.dim = dim
        self.multi_class = multi_class
        self.label_smooth_eps = label_smooth_eps
        # TODO(synk): loss_cls / MultiSimilarityMiner / triplet metric_loss /
        # mlp_head (LayerNorm+Linear) are defined in __init__ but never used
        # by forward(); they are not translated.

    def init_weights(self):
        pass

    def __call__(self, x):
        return infer_head_forward(x)

    def loss(self, embedding, cls_score, label, **kwargs):
        # TODO(synk): training-time loss (CE + mined triplet + top-k acc) is
        # not part of the forward pass and has no Pallas hot path.
        pass


if __name__ == "__main__":
    key = jax.random.PRNGKey(0)
    B, DIM = 2, 1024  # dim matches the module default; batch kept small
    x = jax.random.normal(key, (B, DIM), dtype=jnp.float32)

    head = TestHeadOld(num_classes=10, dim=DIM)
    y = head(x)
    y = jax.block_until_ready(y)

    assert y.shape == x.shape and y.dtype == x.dtype
    assert bool(jnp.all(y == x))
    print("KERNEL_OK")
</pallas_src>

<mosaic_0001>
module attributes {stable_mosaic.version = 11 : i64} {
  func.func @_identity_dma_kernel(%arg0: memref<2x1024xf32, #tpu.memory_space<any>>, %arg1: memref<2x1024xf32, #tpu.memory_space<any>>, %arg2: memref<!tpu.dma_semaphore, #tpu.memory_space<semaphore_mem>>) attributes {dimension_semantics = [], scalar_prefetch = 0 : i64, scratch_operands = 1 : i64, tpu.core_type = #tpu.core_type<tc>} {
    tpu.enqueue_dma source(%arg0 : memref<2x1024xf32, #tpu.memory_space<any>>) target(%arg1 : memref<2x1024xf32, #tpu.memory_space<any>>) target_semaphore(%arg2 : memref<!tpu.dma_semaphore, #tpu.memory_space<semaphore_mem>>)
    tpu.wait_dma2 semaphore(%arg2 : memref<!tpu.dma_semaphore, #tpu.memory_space<semaphore_mem>>) src(%arg0 : memref<2x1024xf32, #tpu.memory_space<any>>) dst(%arg1 : memref<2x1024xf32, #tpu.memory_space<any>>)
    return
  }
}

</mosaic_0001>

<bundles_post_ra>
// kernel: tpu_custom_call.1
= control target key start
LH: loop header
LB: loop body
LE: loop exit
PB: predicated region body
PF: predicated region fallthrough
CT: control target
= control target key end

     0   :  { %s35_s6 = smov [#allocation2]   ;;  %s36_s7 = smov [#allocation3]   ;;  %s54_s0 = inlined_call_operand.hbm [shape: f32[2,1024], index: 0, kind: input, shape index: {}]   ;;  %s55_s1 = inlined_call_operand.hbm [shape: f32[2,1024], index: 1, kind: output, shape index: {}]  }
   0x1   :  { %s37_s8 = smov 0  }
   0x2   :  { %18 = dma.general %s54_s0, 256, %s55_s1, %s35_s6, %s36_s7, [#allocation4], %s37_s8, 0  }
   0x3   :  { %33 = dma.done.wait [#allocation2], 256 }
   0x4   :  { %34 = vsyncadd [#allocation2], 4294967040 }
   0x5   :  { %23 = vsyncmov [#allocation2] }
   0x8   :  { %s24_s13 = vpop.sfrf %23 }
   0x9   :  { %p29_p0 = scmp.ne.s32.totalorder %s24_s13, 0 }
   0xb   :  { %28 = shalt.err (%p29_p0)  }

</bundles_post_ra>
